<compile_context>
chip_gen: v6e
topology: v6e:2x2x1
jax: 0.10.0
libtpu: 0.0.40
codegen_flags: <defaults>
</compile_context>

<pallas_src>
import functools

import jax
import jax.numpy as jnp
from jax.experimental import pallas as pl
from jax.experimental.pallas import tpu as pltpu


def _round_up(a, b):
    return ((a + b - 1) // b) * b


def _max_identity(dtype):
    """Identity element for max, representable in `dtype` (python scalar)."""
    dtype = jnp.dtype(dtype)
    if jnp.issubdtype(dtype, jnp.floating):
        # f16/bf16/f32/f64 all represent -inf; 1-byte fp8 variants may not.
        return float("-inf") if dtype.itemsize >= 2 else float(jnp.finfo(dtype).min)
    if jnp.issubdtype(dtype, jnp.integer):
        return int(jnp.iinfo(dtype).min)
    raise TypeError(f"unsupported dtype for AdaptiveConcatPool1d: {dtype}")


def _concat_pool_kernel(x_ref, out_ref, sum_acc, max_acc, *, inv_l, rem_l, max_ident):
    """One (tR, tL) block of the flattened (rows, L) input.

    Grid: (row_tiles [parallel], l_tiles [arbitrary]).
    sum_acc: (tR, 1) f32 running sum;  max_acc: (tR, 1) running max (x dtype).
    out_ref: (tR, 2) -- column 0 = mean, column 1 = max.
    """
    k = pl.program_id(1)
    num_k = pl.num_programs(1)

    @pl.when(k == 0)
    def _init():
        sum_acc[...] = jnp.zeros_like(sum_acc)
        max_acc[...] = jnp.full_like(max_acc, max_ident)

    x = x_ref[...]                                       # (tR, tL), native dtype

    def _accumulate(x_sum, x_max):
        sum_acc[...] += jnp.sum(x_sum.astype(jnp.float32), axis=-1, keepdims=True)
        max_acc[...] = jnp.maximum(max_acc[...],
                                   jnp.max(x_max, axis=-1, keepdims=True))

    if rem_l:
        # L is not divisible by the L tile: only the LAST L tile has undefined
        # lanes (no wrapper padding), so only it pays the mask cost.
        @pl.when(k == num_k - 1)
        def _edge_tile():
            lane = jax.lax.broadcasted_iota(jnp.int32, x.shape, 1)
            valid = lane < rem_l
            _accumulate(jnp.where(valid, x, 0), jnp.where(valid, x, max_ident))

        @pl.when(k != num_k - 1)
        def _full_tile():
            _accumulate(x, x)
    else:
        _accumulate(x, x)

    @pl.when(k == num_k - 1)
    def _finalize():
        out_ref[:, 0:1] = (sum_acc[...] * inv_l).astype(out_ref.dtype)
        out_ref[:, 1:2] = max_acc[...].astype(out_ref.dtype)


def adaptive_concat_pool1d(x, *, l_tile=2048, target_block_bytes=4 * 1024 * 1024):
    """x: (N, C, L) -> (N, 2*C, 1), matching torch AdaptiveConcatPool1d."""
    N, C, L = x.shape
    dtype = x.dtype
    itemsize = jnp.dtype(dtype).itemsize
    R = N * C
    x2 = x.reshape(R, L)                      # contiguous view, no HBM copy

    # ---- reduction (lane) axis tiling ----
    if L <= l_tile:
        tL = L                                # full-dim block: no lane masking
    else:
        assert l_tile % 128 == 0, "l_tile must be a multiple of 128"
        tL = l_tile
    num_l = pl.cdiv(L, tL)
    rem_l = (L % tL) if num_l > 1 else 0      # >0 -> mask the last L tile

    # ---- row (sublane) axis tiling: ~target_block_bytes per block ----
    tR = max(8, (target_block_bytes // max(1, tL * itemsize)) // 8 * 8)
    tR = min(tR, _round_up(R, 8))             # no point exceeding the row count
    num_r = pl.cdiv(R, tR)
    if R > 8 and num_r == 1:
        # v7x megacore: give the 'parallel' row axis >= 2 balanced tiles so
        # both TensorCores get work (negligible cost on single-TC v5e/v6e).
        tR = max(8, _round_up(pl.cdiv(R, 2), 8))
    elif num_r > 1:
        # Re-balance so the last row tile is not nearly empty.
        tR = max(8, _round_up(pl.cdiv(R, num_r), 8))
    num_r = pl.cdiv(R, tR)
    Rp = num_r * tR                           # tiny output, sliced back to R

    # ---- VMEM budget: just what the tiles need (double-buffered) + headroom ----
    block_bytes = tR * tL * itemsize
    vmem_need = 2 * block_bytes + 2 * tR * 2 * itemsize + tR * (4 + itemsize)
    vmem_limit = int(min(32 * 1024 * 1024, max(8 * 1024 * 1024, 2 * vmem_need)))

    kernel = functools.partial(_concat_pool_kernel,
                               inv_l=1.0 / L,
                               rem_l=rem_l,
                               max_ident=_max_identity(dtype))

    out = pl.pallas_call(
        kernel,
        out_shape=jax.ShapeDtypeStruct((Rp, 2), dtype),
        grid_spec=pltpu.PrefetchScalarGridSpec(
            num_scalar_prefetch=0,
            grid=(num_r, num_l),
            in_specs=[pl.BlockSpec((tR, tL), lambda i, k: (i, k))],
            out_specs=pl.BlockSpec((tR, 2), lambda i, k: (i, 0)),
            scratch_shapes=[pltpu.VMEM((tR, 1), jnp.float32),   # running sum
                            pltpu.VMEM((tR, 1), dtype)]),       # running max
        compiler_params=pltpu.CompilerParams(
            dimension_semantics=("parallel", "arbitrary"),
            vmem_limit_bytes=vmem_limit),
    )(x2)

    # Tiny post-processing in plain XLA: drop edge rows, restore NCL layout.
    avg = out[:R, 0].reshape(N, C, 1)
    mx = out[:R, 1].reshape(N, C, 1)
    return jnp.concatenate([avg, mx], axis=1)            # (N, 2*C, 1)


def _reference(x):
    return jnp.concatenate([jnp.mean(x, axis=-1, keepdims=True),
                            jnp.max(x, axis=-1, keepdims=True)], axis=1)


if __name__ == "__main__":
    key = jax.random.PRNGKey(0)

    # Small shape implied by the module: batch=2, channels=4, length=16.
    N, C, L = 2, 4, 16
    x = jax.random.normal(key, (N, C, L), dtype=jnp.float32)
    out = adaptive_concat_pool1d(x)
    jax.block_until_ready(out)
    assert out.shape == (N, 2 * C, 1), out.shape
    assert jnp.allclose(out, _reference(x), atol=1e-5, rtol=1e-5), "mismatch (base)"

    # Ragged L with tiled reduction axis (exercises last-L-tile masking) and a
    # row count that is not a multiple of 8 (exercises the edge row block).
    x2 = jax.random.normal(jax.random.PRNGKey(1), (2, 3, 200), dtype=jnp.float32)
    out2 = adaptive_concat_pool1d(x2, l_tile=128)
    jax.block_until_ready(out2)
    assert out2.shape == (2, 6, 1), out2.shape
    assert jnp.allclose(out2, _reference(x2), atol=1e-5, rtol=1e-5), "mismatch (tiled L)"

    # Multi-row-tile path (balanced 'parallel' row axis for megacore).
    x3 = jax.random.normal(jax.random.PRNGKey(2), (4, 8, 300), dtype=jnp.float32)
    out3 = adaptive_concat_pool1d(x3)
    jax.block_until_ready(out3)
    assert out3.shape == (4, 16, 1), out3.shape
    assert jnp.allclose(out3, _reference(x3), atol=1e-5, rtol=1e-5), "mismatch (multi-row)"

    print("KERNEL_OK")
</pallas_src>

<mosaic_0001>
module attributes {stable_mosaic.version = 11 : i64} {
  func.func @_concat_pool_kernel(%arg0: i32, %arg1: i32, %arg2: memref<8x16xf32, #tpu.memory_space<vmem>>, %arg3: memref<8x2xf32, #tpu.memory_space<vmem>>, %arg4: memref<8x1xf32, #tpu.memory_space<vmem>>, %arg5: memref<8x1xf32, #tpu.memory_space<vmem>>) attributes {dimension_semantics = [#tpu.dimension_semantics<parallel>, #tpu.dimension_semantics<arbitrary>], iteration_bounds = array<i64: 1, 1>, scalar_prefetch = 0 : i64, scratch_operands = 2 : i64, tpu.core_type = #tpu.core_type<tc>, window_params = [{transform_indices = @transform_0, window_bounds = array<i64: 8, 16>}, {transform_indices = @transform_1, window_bounds = array<i64: 8, 2>}]} {
    %c0_i32 = arith.constant 0 : i32
    %0 = arith.cmpi eq, %arg1, %c0_i32 : i32
    %1 = arith.extui %0 : i1 to i32
    %c0_i32_0 = arith.constant 0 : i32
    %2 = arith.cmpi ne, %1, %c0_i32_0 : i32
    scf.if %2 {
      %cst_13 = arith.constant 0.000000e+00 : f32
      %17 = vector.broadcast %cst_13 : f32 to vector<8x1xf32>
      %c0_14 = arith.constant 0 : index
      %c0_15 = arith.constant 0 : index
      %18 = vector.load %arg4[%c0_14, %c0_15] : memref<8x1xf32, #tpu.memory_space<vmem>>, vector<8x1xf32>
      tpu.vector_store %arg4[%c0_14, %c0_15], %17 {strides = array<i32>} : memref<8x1xf32, #tpu.memory_space<vmem>>, vector<8x1xf32>,
      %cst_16 = arith.constant 0xFF800000 : f32
      %19 = vector.broadcast %cst_16 : f32 to vector<8x1xf32>
      %c0_17 = arith.constant 0 : index
      %c0_18 = arith.constant 0 : index
      %20 = vector.load %arg5[%c0_17, %c0_18] : memref<8x1xf32, #tpu.memory_space<vmem>>, vector<8x1xf32>
      tpu.vector_store %arg5[%c0_17, %c0_18], %19 {strides = array<i32>} : memref<8x1xf32, #tpu.memory_space<vmem>>, vector<8x1xf32>,
    } else {
    }
    %c0 = arith.constant 0 : index
    %c0_1 = arith.constant 0 : index
    %3 = vector.load %arg2[%c0, %c0_1] : memref<8x16xf32, #tpu.memory_space<vmem>>, vector<8x16xf32>
    %c0_2 = arith.constant 0 : index
    %c0_3 = arith.constant 0 : index
    %4 = vector.load %arg4[%c0_2, %c0_3] : memref<8x1xf32, #tpu.memory_space<vmem>>, vector<8x1xf32>
    %cst = arith.constant dense<0.000000e+00> : vector<8xf32>
    %5 = vector.multi_reduction <add>, %3, %cst [1] : vector<8x16xf32> to vector<8xf32>
    %6 = vector.shape_cast %5 : vector<8xf32> to vector<8x1xf32>
    %7 = arith.addf %4, %6 : vector<8x1xf32>
    %c0_4 = arith.constant 0 : index
    %c0_5 = arith.constant 0 : index
    %8 = vector.load %arg4[%c0_4, %c0_5] : memref<8x1xf32, #tpu.memory_space<vmem>>, vector<8x1xf32>
    tpu.vector_store %arg4[%c0_4, %c0_5], %7 {strides = array<i32>} : memref<8x1xf32, #tpu.memory_space<vmem>>, vector<8x1xf32>,
    %c0_6 = arith.constant 0 : index
    %c0_7 = arith.constant 0 : index
    %9 = vector.load %arg5[%c0_6, %c0_7] : memref<8x1xf32, #tpu.memory_space<vmem>>, vector<8x1xf32>
    %cst_8 = arith.constant dense<0xFF800000> : vector<8xf32>
    %10 = vector.multi_reduction <maximumf>, %3, %cst_8 [1] : vector<8x16xf32> to vector<8xf32>
    %11 = vector.shape_cast %10 : vector<8xf32> to vector<8x1xf32>
    %12 = arith.maximumf %9, %11 : vector<8x1xf32>
    %c0_9 = arith.constant 0 : index
    %c0_10 = arith.constant 0 : index
    %13 = vector.load %arg5[%c0_9, %c0_10] : memref<8x1xf32, #tpu.memory_space<vmem>>, vector<8x1xf32>
    tpu.vector_store %arg5[%c0_9, %c0_10], %12 {strides = array<i32>} : memref<8x1xf32, #tpu.memory_space<vmem>>, vector<8x1xf32>,
    %c0_i32_11 = arith.constant 0 : i32
    %14 = arith.cmpi eq, %arg1, %c0_i32_11 : i32
    %15 = arith.extui %14 : i1 to i32
    %c0_i32_12 = arith.constant 0 : i32
    %16 = arith.cmpi ne, %15, %c0_i32_12 : i32
    scf.if %16 {
      %c0_13 = arith.constant 0 : index
      %c0_14 = arith.constant 0 : index
      %17 = vector.load %arg4[%c0_13, %c0_14] : memref<8x1xf32, #tpu.memory_space<vmem>>, vector<8x1xf32>
      %cst_15 = arith.constant 6.250000e-02 : f32
      %18 = vector.broadcast %cst_15 : f32 to vector<8x1xf32>
      %19 = arith.mulf %17, %18 : vector<8x1xf32>
      %c0_16 = arith.constant 0 : index
      %c0_17 = arith.constant 0 : index
      %20 = vector.load %arg3[%c0_16, %c0_17] : memref<8x2xf32, #tpu.memory_space<vmem>>, vector<8x1xf32>
      tpu.vector_store %arg3[%c0_16, %c0_17], %19 {strides = array<i32>} : memref<8x2xf32, #tpu.memory_space<vmem>>, vector<8x1xf32>,
      %c0_18 = arith.constant 0 : index
      %c0_19 = arith.constant 0 : index
      %21 = vector.load %arg5[%c0_18, %c0_19] : memref<8x1xf32, #tpu.memory_space<vmem>>, vector<8x1xf32>
      %c0_20 = arith.constant 0 : index
      %c1 = arith.constant 1 : index
      %22 = vector.load %arg3[%c0_20, %c1] : memref<8x2xf32, #tpu.memory_space<vmem>>, vector<8x1xf32>
      tpu.vector_store %arg3[%c0_20, %c1], %21 {strides = array<i32>} : memref<8x2xf32, #tpu.memory_space<vmem>>, vector<8x1xf32>,
    } else {
    }
    return
  }
  func.func @transform_0(%arg0: i32, %arg1: i32) -> (i32, i32) {
    %c0_i32 = arith.constant 0 : i32
    return %arg0, %arg1 : i32, i32
  }
  func.func @transform_1(%arg0: i32, %arg1: i32) -> (i32, i32) {
    %c0_i32 = arith.constant 0 : i32
    %c0_i32_0 = arith.constant 0 : i32
    return %arg0, %c0_i32 : i32, i32
  }
}

</mosaic_0001>

<bundles_post_ra>
// kernel: tpu_custom_call.1
= control target key start
LH: loop header
LB: loop body
LE: loop exit
PB: predicated region body
PF: predicated region fallthrough
CT: control target
= control target key end

     0   :  { %6 = vsyncpa [#allocation5], 0  ;;  %s86_s6 = smov [#allocation4]   ;;  %s114_s0 = inlined_call_operand.hbm [shape: f32[8,16], index: 0, kind: input, shape index: {}]   ;;  %s115_s1 = inlined_call_operand.vmem [shape: f32[8,2], index: 1, kind: output, shape index: {}]  }
   0x1   :  { %s13_s7 = sshll.u32 %s86_s6, 4  ;;  %s14_s7 = int_to_ptr.vmem [resolvable:$true] %s13_s7 }
   0x2   :  { %s72_s8 = scalar_lea.vmem %s14_s7, 128  ;;  %p77_p1 = scmp.lt.s32.totalorder %s14_s7, %s14_s7 }
   0x3   :  { %p73_p0 = scmp.ne.s32.totalorder %s14_s7, %s72_s8  ;;  %p78_p2 = scmp.lt.s32.totalorder %s72_s8, %s72_s8 }
   0x5   :  { %p79_p3 = por %p78_p2, %p77_p1 }
   0x7   :  { %p80_p4 = pnand %p79_p3, %p73_p0 }
   0x9   :  { %83 = shalt.err (!%p80_p4)
}
   0xa   :  { %16 = dma.hbm_to_vmem [thread:$0]  %s114_s0, 128, %s14_s7, [#allocation5]  }
   0xb   :  { %84 = dma.done.wait [#allocation5], 128  }
   0xc   :  { %85 = vsyncadd [#allocation5], 4294967168  ;;  %vm24_vm0 = vcmask 7168   ;;  %v87_v0 = vmov -inf   ;;  %vm29_vm1 = vcmask 130048   ;;  %v27_v1 = vld [vmem:[#allocation4] sm:$0xff] }
   0xd   :  { %26 = vst.msk [vmem:[#allocation3] sm:$0xff] %vm24_vm0, %v87_v0  ;;  %v37_v2 = vsel %vm29_vm1, %v27_v1, -inf  ;;  %v30_v3 = vsel %vm29_vm1, %v27_v1, 0.0  ;;  %v88_v4 = vmov 0.0   ;;  %s89_s0 = smov 1   ;;  %vm53_vm2 = vcmask 15368  }
   0xe   :  { %38 = vmax.xlane.f32.xlu0 %v37_v2  ;;  %25 = vst.msk [vmem:[#allocation2] sm:$0xff] %vm24_vm0, %v88_v4 }
  0x12   :  { %31 = vadd.xlane.f32.xlu0 %v30_v3 }
  0x14   :  { %v36_v5 = vld [vmem:[#allocation3] sm:$0xff] }
  0x15   :  { %v28_v8 = vld [vmem:[#allocation2] sm:$0xff] }
  0x97   :  { %v39_v6 = vpop.xlane.xlu0 %38 }
  0x98   :  { %v40_v7 = vmax.f32 %v36_v5, %v39_v6 }
  0x9a   :  { %41 = vst.msk [vmem:[#allocation3] sm:$0xff] %vm24_vm0, %v40_v7 }
  0x9b   :  { %v32_v9 = vpop.xlane.xlu0 %31 }
  0x9c   :  { %v33_v10 = vadd.f32 %v32_v9, %v28_v8 }
  0x9e   :  { %35 = vst.msk [vmem:[#allocation2] sm:$0xff] %vm24_vm0, %v33_v10 }
  0xa1   :  { %v48_v11 = vld [vmem:[#allocation3] sm:$0xff] }
  0xa2   :  { %50 = vrot.lane.b32.xlu1 %v48_v11, %s89_s0 }
  0xa5   :  { %v45_v12 = vld [vmem:[#allocation2] sm:$0xff] }
  0xa6   :  { %v46_v13 = vmul.f32 0.0625, %v45_v12 }
  0xa8   :  { %47 = vst.msk [vmem:[%s115_s1] sm:$0xff] %vm24_vm0, %v46_v13 }
 0x114   :  { %v51_v14 = vpop.permute.xlu1 %50 }
 0x115   :  { %54 = vst.msk [vmem:[%s115_s1] sm:$0xff] %vm53_vm2, %v51_v14 }
 0x116   :  { %59 = vsyncpa [#allocation5], 1 }

</bundles_post_ra>
